<compile_context>
chip_gen: v5e
topology: v5e:2x2
jax: 0.10.0
libtpu: 0.0.40
codegen_flags: <defaults>
</compile_context>

<pallas_src>
import jax
import jax.numpy as jnp
from jax.experimental import pallas as pl
from jax.experimental.pallas import tpu as pltpu


def adain_kernel(scale_ref, shift_ref, x_ref, o_ref):
    """Elementwise FMA: o = scale * x + shift (per-channel params broadcast over HW lanes).

    scale_ref: (1, C_t, 1)     f32, already contains (1 + gamma)
    shift_ref: (1, C_t, 1)     f32, beta
    x_ref    : (1, C_t, HW_t)  input features (NCHW with H*W flattened on lanes)
    o_ref    : (1, C_t, HW_t)
    """
    o_ref[...] = (x_ref[...] * scale_ref[...] + shift_ref[...]).astype(o_ref.dtype)


def _choose_tiles(C, HW, itemsize):
    """Pick (c_tile, hw_tile) satisfying the (8,128) rule and a ~2 MiB block budget."""
    # Lane (last) dim: prefer a big multiple of 128 that divides HW (512-1024
    # sweet spot per measured roofline); otherwise take full extent (always legal).
    if HW % 128 == 0:
        hw_t = 128
        for cand in (1024, 512, 256, 128):
            if HW % cand == 0:
                hw_t = cand
                break
    else:
        hw_t = HW
    # Sublane (channel) dim: a multiple of 8 dividing C, or full C; cap block bytes
    # so a double-buffered input + output block fits comfortably in scoped VMEM.
    budget = 2 * 1024 * 1024
    max_c = max(1, budget // (hw_t * itemsize))
    if C % 8 == 0:
        c_t = 8
        while c_t * 2 <= min(C, max_c) and C % (c_t * 2) == 0:
            c_t *= 2
    else:
        c_t = C  # full extent: legal even when not a multiple of 8
    return c_t, hw_t


def adain_forward(x_nchw, s, w_fc, b_fc):
    """x_nchw: (N, C, H, W); s: (N, S); w_fc: (2C, S); b_fc: (2C,) — PyTorch Linear layout."""
    N, C, H, W = x_nchw.shape
    HW = H * W

    # Hoist the tiny style matmul out of the kernel (pure XLA, negligible cost),
    # and fold the "+1" into the scale so the kernel is a single FMA per element.
    h = jnp.dot(s.astype(jnp.float32), w_fc.astype(jnp.float32).T,
                preferred_element_type=jnp.float32) + b_fc.astype(jnp.float32)   # (N, 2C)
    scale = (1.0 + h[:, :C]).reshape(N, C, 1)    # f32, (N, C, 1)
    shift = h[:, C:].reshape(N, C, 1)            # f32, (N, C, 1)

    # NCHW kept native: just flatten the spatial dims onto the lane axis (free reshape).
    x = x_nchw.reshape(N, C, HW)

    c_t, hw_t = _choose_tiles(C, HW, x.dtype.itemsize)
    grid = (N, C // c_t, HW // hw_t)

    out = pl.pallas_call(
        adain_kernel,
        out_shape=jax.ShapeDtypeStruct((N, C, HW), x.dtype),
        grid=grid,
        in_specs=[
            pl.BlockSpec((1, c_t, 1), lambda n, c, hw: (n, c, 0)),       # scale (1+gamma)
            pl.BlockSpec((1, c_t, 1), lambda n, c, hw: (n, c, 0)),       # shift (beta)
            pl.BlockSpec((1, c_t, hw_t), lambda n, c, hw: (n, c, hw)),   # x block
        ],
        out_specs=pl.BlockSpec((1, c_t, hw_t), lambda n, c, hw: (n, c, hw)),
        compiler_params=pltpu.CompilerParams(
            dimension_semantics=("parallel", "parallel", "parallel"),
            vmem_limit_bytes=32 * 1024 * 1024,
        ),
    )(scale, shift, x)

    return out.reshape(N, C, H, W)


def adain_reference(x_nchw, s, w_fc, b_fc):
    """Pure-JAX reference mirroring the PyTorch forward."""
    C = x_nchw.shape[1]
    h = s @ w_fc.T + b_fc                    # (N, 2C)
    gamma = h[:, :C][:, :, None, None]
    beta = h[:, C:][:, :, None, None]
    return (1.0 + gamma) * x_nchw + beta


if __name__ == "__main__":
    # Small, forward-consistent shapes.
    N, C, H, W = 2, 4, 16, 16
    style_dim = 8

    key = jax.random.PRNGKey(0)
    kx, ks, kw, kb = jax.random.split(key, 4)

    x = jax.random.normal(kx, (N, C, H, W), dtype=jnp.float32)
    s = jax.random.normal(ks, (N, style_dim), dtype=jnp.float32)

    # Deterministic nn.Linear(style_dim, 2*C)-shaped parameters (uniform ±1/sqrt(fan_in)).
    bound = 1.0 / (style_dim ** 0.5)
    w_fc = jax.random.uniform(kw, (2 * C, style_dim), dtype=jnp.float32,
                              minval=-bound, maxval=bound)
    b_fc = jax.random.uniform(kb, (2 * C,), dtype=jnp.float32,
                              minval=-bound, maxval=bound)

    out = adain_forward(x, s, w_fc, b_fc)
    out = jax.block_until_ready(out)

    ref = adain_reference(x, s, w_fc, b_fc)
    assert out.shape == (N, C, H, W)
    assert jnp.allclose(out, ref, atol=1e-5, rtol=1e-5), "Pallas output mismatch vs reference"

    print("KERNEL_OK")
</pallas_src>

<mosaic_0001>
module attributes {stable_mosaic.version = 11 : i64} {
  func.func @adain_kernel(%arg0: i32, %arg1: i32, %arg2: i32, %arg3: memref<1x4x1xf32, #tpu.memory_space<vmem>>, %arg4: memref<1x4x1xf32, #tpu.memory_space<vmem>>, %arg5: memref<1x4x256xf32, #tpu.memory_space<vmem>>, %arg6: memref<1x4x256xf32, #tpu.memory_space<vmem>>) attributes {dimension_semantics = [#tpu.dimension_semantics<parallel>, #tpu.dimension_semantics<parallel>, #tpu.dimension_semantics<parallel>], iteration_bounds = array<i64: 2, 1, 1>, scalar_prefetch = 0 : i64, scratch_operands = 0 : i64, tpu.core_type = #tpu.core_type<tc>, window_params = [{transform_indices = @transform_0, window_bounds = array<i64: 1, 4, 1>}, {transform_indices = @transform_1, window_bounds = array<i64: 1, 4, 1>}, {transform_indices = @transform_2, window_bounds = array<i64: 1, 4, 256>}, {transform_indices = @transform_3, window_bounds = array<i64: 1, 4, 256>}]} {
    %c0 = arith.constant 0 : index
    %c0_0 = arith.constant 0 : index
    %c0_1 = arith.constant 0 : index
    %0 = vector.load %arg5[%c0, %c0_0, %c0_1] : memref<1x4x256xf32, #tpu.memory_space<vmem>>, vector<1x4x256xf32>
    %c0_2 = arith.constant 0 : index
    %c0_3 = arith.constant 0 : index
    %c0_4 = arith.constant 0 : index
    %1 = vector.load %arg3[%c0_2, %c0_3, %c0_4] : memref<1x4x1xf32, #tpu.memory_space<vmem>>, vector<1x4x1xf32>
    %2 = vector.broadcast %1 : vector<1x4x1xf32> to vector<1x4x256xf32>
    %3 = arith.mulf %0, %2 : vector<1x4x256xf32>
    %c0_5 = arith.constant 0 : index
    %c0_6 = arith.constant 0 : index
    %c0_7 = arith.constant 0 : index
    %4 = vector.load %arg4[%c0_5, %c0_6, %c0_7] : memref<1x4x1xf32, #tpu.memory_space<vmem>>, vector<1x4x1xf32>
    %5 = vector.broadcast %4 : vector<1x4x1xf32> to vector<1x4x256xf32>
    %6 = arith.addf %3, %5 : vector<1x4x256xf32>
    %c0_8 = arith.constant 0 : index
    %c0_9 = arith.constant 0 : index
    %c0_10 = arith.constant 0 : index
    %7 = vector.load %arg6[%c0_8, %c0_9, %c0_10] : memref<1x4x256xf32, #tpu.memory_space<vmem>>, vector<1x4x256xf32>
    tpu.vector_store %arg6[%c0_8, %c0_9, %c0_10], %6 {strides = array<i32>} : memref<1x4x256xf32, #tpu.memory_space<vmem>>, vector<1x4x256xf32>,
    return
  }
  func.func @transform_0(%arg0: i32, %arg1: i32, %arg2: i32) -> (i32, i32, i32) {
    %c0_i32 = arith.constant 0 : i32
    %c0_i32_0 = arith.constant 0 : i32
    return %arg0, %arg1, %c0_i32 : i32, i32, i32
  }
  func.func @transform_1(%arg0: i32, %arg1: i32, %arg2: i32) -> (i32, i32, i32) {
    %c0_i32 = arith.constant 0 : i32
    %c0_i32_0 = arith.constant 0 : i32
    return %arg0, %arg1, %c0_i32 : i32, i32, i32
  }
  func.func @transform_2(%arg0: i32, %arg1: i32, %arg2: i32) -> (i32, i32, i32) {
    %c0_i32 = arith.constant 0 : i32
    return %arg0, %arg1, %arg2 : i32, i32, i32
  }
  func.func @transform_3(%arg0: i32, %arg1: i32, %arg2: i32) -> (i32, i32, i32) {
    %c0_i32 = arith.constant 0 : i32
    return %arg0, %arg1, %arg2 : i32, i32, i32
  }
}

</mosaic_0001>

<bundles_post_ra>
// kernel: tpu_custom_call.1
= control target key start
LH: loop header
LB: loop body
LE: loop exit
PB: predicated region body
PF: predicated region fallthrough
CT: control target
= control target key end

     0   :  { %8 = vsyncpa [#allocation3], 0  ;;  %s721_s0 = inlined_call_operand.vmem [shape: f32[2,4,1], index: 0, kind: input, shape index: {}]   ;;  %s722_s1 = inlined_call_operand.vmem [shape: f32[2,4,1], index: 1, kind: input, shape index: {}]   ;;  %s723_s2 = inlined_call_operand.vmem [shape: f32[2,4,256], index: 2, kind: input, shape index: {}]   ;;  %s724_s3 = inlined_call_operand.hbm [shape: f32[2,4,256], index: 3, kind: output, shape index: {}]  }
   0x1   :  { %10 = vsyncpa [#allocation3 + $0x1], 0  ;;  %s618_s12 = smov 0   ;;  %s620_s13 = smov 0  }
   0x2   :  { %s622_s14 = smov 0   ;;  %s624_s15 = smov 0  }
   0x3   :  { %s626_s16 = smov 0   ;;  %s628_s17 = smov 0  }
   0x4 LB: > { %s441_s18 = sadd.s32 4294967295, %s594_s17   ;;  %s442_s19 = sadd.s32 4294967294, %s594_s17   ;;  %s594_s17 = sphi %s628_s17, %s16_s17   ;;  %s590_s16 = sphi %s626_s16, %s731_s16   ;;  %s586_s15 = sphi %s624_s15, %s730_s15   ;;  %s582_s14 = sphi %s622_s14, %s729_s14   ;;  %s578_s13 = sphi %s620_s13, %s728_s13   ;;  %s574_s12 = sphi %s618_s12, %s727_s12  }
   0x5   : > { %s35_s20 = sadd.s32 1, %s590_s16  ;;  %s132_s21 = sadd.s32 1, %s582_s14 }
   0x6   : > { %p37_p0 = scmp.ge.s32.totalorder %s35_s20, 2  ;;  %p142_p1 = scmp.ne.s32.totalorder %s582_s14, %s578_s13 }
   0x7   : > { %p143_p2 = scmp.eq.s32.totalorder %s441_s18, 1  ;;  %p148_p3 = scmp.ne.s32.totalorder %s578_s13, %s574_s12 }
   0x8   : > { %s733_s20 = smov (%p37_p0, %s35_s20), 0  ;;  %p149_p5 = scmp.eq.s32.totalorder %s442_s19, 1 }
   0x9   : > { %p658_p4 = por %p143_p2, %p142_p1  ;;  %s125_s23 = ssub.s32 %s590_s16, %s733_s20 }
   0xa   : > { %p445_p6 = scmp.ge.s32.totalorder %s594_s17, 1  ;;  %p130_p7 = scmp.eq.s32.totalorder %s125_s23, 0 }
   0xb   : > { %p665_p8 = por %p149_p5, %p148_p3  ;;  %p204_p9 = scmp.lt.s32.totalorder %s594_s17, 3 }
   0xc   : > { %s671_s25 = scalar_select %p130_p7, %s582_s14, %s132_s21  }
   0xd   : > { %p205_p10 = pnand %p445_p6, %p204_p9 }
   0xe   : > { %p250_p11 = scmp.lt.s32.totalorder (!%p205_p10), %s586_s15, 1  ;;  %s247_s7 = sand.u32 (!%p205_p10), 1, %s578_s13  }
   0xf   : > { %208 = sbr.rel (%p205_p10) target bundleno = 155 (0x9b), region = 32  ;;  %s446_s9 = sshll.u32 (!%p205_p10), %s247_s7, 3 }
  0x10   : > { %s457_s10 = sshll.u32 (!%p205_p10), %s586_s15, 3 }
  0x11   : > { %s319_s28 = scalar_lea.hbm (!%p205_p10), %s724_s3, %s457_s10 }
  0x14   : > { %v596_v0 = vmov 0   ;;  %s251_s26 = scalar_select %p250_p11, %s586_s15, 1  ;;  %v597_v3 = vmov 839922192  }
  0x15   : > { %515 = vset.pattern.permute.xlu0 %v596_v0  ;;  %v286_v4 = vunpack.c.l.s4 %v597_v3  ;;  %s304_s15 = scalar_lea.sflag [#allocation3], %s247_s7 }
  0x16   : > { %s447_s27 = sshll.u32 %s251_s26, 2  ;;  %s456_s8 = sshll.u32 %s251_s26, 3 }
  0x17   : > { %s256_s30 = scalar_lea.vmem %s721_s0, %s447_s27  ;;  %s263_s6 = scalar_lea.vmem %s722_s1, %s447_s27  ;;  %v287_v6 = vunpack.c.0.s8 %v286_v4 }
  0x18   : > { %v280_v1 = vld [vmem:[%s256_s30] sm:$0xf]  ;;  %s276_s19 = scalar_lea.vmem %s723_s2, %s456_s8  ;;  %s249_s27 = scalar_lea.vmem [#allocation2], %s446_s9 }
  0x19   : > { %283 = vperm.xlu0 %515, %v280_v1   ;;  %v291_v2 = vld [vmem:[%s263_s6] sm:$0xf]  ;;  %s321_s29 = sshll.u32 %s249_s27, 4  ;;  %s323_s30 = sshll.u32 %s319_s28, 4  ;;  %s322_s29 = int_to_ptr.vmem [resolvable:$true] %s321_s29  ;;  %s324_s30 = int_to_ptr.hbm [resolvable:$true] %s323_s30 }
  0x1a   : > { %v279_v8 = vld [vmem:[%s276_s19] sm:$0xff]  ;;  %s530_s26 = sshra.s32 %s324_s30, 4  ;;  %s536_s8 = scalar_lea.hbm %s724_s3, 16  ;;  %s531_s26 = int_to_ptr.hbm [resolvable:$true] %s530_s26 }
  0x1b   : > { %s532_s4 = scalar_lea.hbm %s531_s26, 8  ;;  %p537_p1 = scmp.lt.s32.totalorder %s531_s26, %s724_s3 }
  0x1c   : > { %p533_p12 = scmp.ne.s32.totalorder %s531_s26, %s532_s4  ;;  %p538_p2 = scmp.lt.s32.totalorder %s536_s8, %s532_s4 }
  0x1e   : > { %p534_p13 = pnand %p533_p12, %p658_p4  ;;  %p539_p3 = por %p538_p2, %p537_p1 }
  0x20   : > { %p535_p0 = pneg %p534_p13 }
  0x21   : > { %294 = vperm.xlu0 %515, %v291_v2  }
  0x22   : > { %p540_p5 = pnand %p539_p3, %p535_p0 }
  0x8b   : > { %v284_v5 = vpop.permute.xlu0 %283 }
  0x8c   : > { %v288_v7 = vperm.slane %v284_v5, %v287_v6 }
  0x8e   : > { %v290_v10 = vmul.f32 %v288_v7, %v279_v8 }
  0x93   : > { %v295_v9 = vpop.permute.xlu0 %294 }
  0x94   : > { %v299_v11 = vperm.slane %v295_v9, %v287_v6 }
  0x96   : > { %v301_v12 = vadd.f32 %v299_v11, %v290_v10 }
  0x98   : > { %302 = vst [vmem:[%s249_s27] sm:$0xff] %v301_v12 }
  0x99   : > { %543 = shalt.err (!%p540_p5)
}
  0x9a   : > { %458 = dma.vmem_to_hbm [thread:$0]  (%p658_p4), %s322_s29, 128, %s324_s30, %s304_s15  }
  0x9b PF: > { %p464_p6 = scmp.ge.s32.totalorder %s594_s17, 2  ;;  %s335_s7 = sand.u32 1, %s574_s12  }
  0x9c   : > { %s336_s11 = scalar_lea.sflag [#allocation3], %s335_s7 }
  0x9d   : > { %p461_p7 = pnand %p464_p6, %p665_p8 }
  0x9f   : > { %p462_p9 = pneg %p461_p7 }
  0xa1   : > { %569 = dma.done.wait (%p462_p9), %s336_s11, 128  }
  0xa2   : > { %571 = vsyncadd (%p462_p9), %s336_s11, 4294967168  ;;  %s16_s17 = sadd.s32 1, %s594_s17   ;;  %s727_s12 = smov %s578_s13 }
  0xa3   : > { %p13_p10 = scmp.ge.s32.totalorder %s16_s17, 4   ;;  %s728_s13 = smov %s582_s14 }
  0xa4   : > { %s729_s14 = smov %s671_s25  ;;  %s730_s15 = smov %s590_s16 }
  0xa5   : > { %s731_s16 = smov %s733_s20  ;;  %15 = sbr.rel (!%p13_p10) target bundleno = 4 (0x4), region = 73 }
  0xaa   :  { %342 = vsyncpa [#allocation3], 1 }
  0xab   :  { %344 = vsyncpa [#allocation3 + $0x1], 1 }

</bundles_post_ra>
